<compile_context>
chip_gen: v6e
topology: v6e:2x2x1
jax: 0.10.0
libtpu: 0.0.40
codegen_flags: <defaults>
</compile_context>

<pallas_src>
from functools import partial

import jax
import jax.numpy as jnp
from jax import lax
from jax.experimental import pallas as pl
from jax.experimental.pallas import tpu as pltpu


def upsample1d_kernel(x_ref, w_ref, b_ref, y_ref):
    # x_ref: (bt, C, T)      NCT input block (no wrapper transpose)
    # w_ref: (4, C_in, C_out) per-tap weights, w_ref[k] == weight[:, :, k]
    # b_ref: (1, C_out)      bias
    # y_ref: (bt, T, 2C)     output block, row t = [even_t | odd_t]
    bt, C, T = x_ref.shape
    rows = bt * T

    # In-kernel NCT -> NLC transpose (XLU), then merge leading dims so the
    # channel mix is one lane-dense (rows, C) slab.  The merge is a free view
    # when T % 8 == 0 (sublane-aligned); otherwise it is a perf copy only.
    x = jnp.swapaxes(x_ref[...], 1, 2).reshape(rows, C)

    # Time index per row at (rows, 1); jnp.where broadcasts it along lanes.
    t_idx = lax.broadcasted_iota(jnp.int32, (bt, T, 1), 1).reshape(rows, 1)

    # +/-1 time taps via non-negative sublane rolls (XLU).  Rolling the
    # flattened rows wraps across batch boundaries, but the wrapped rows are
    # exactly the t==0 / t==T-1 rows zeroed here, reproducing ConvTranspose1d's
    # implicit zero padding.
    x_prev = jnp.where(t_idx == 0, 0.0, pltpu.roll(x, shift=1, axis=0))          # x[t-1]
    x_next = jnp.where(t_idx == T - 1, 0.0, pltpu.roll(x, shift=rows - 1, axis=0))  # x[t+1]

    bias = b_ref[...].astype(jnp.float32)                      # (1, C) broadcast

    # Four accumulating MXU dots, f32 accumulation; no zero-padded weights,
    # no 3C-wide concat.
    y_even = (jnp.dot(x, w_ref[1], preferred_element_type=jnp.float32)
              + jnp.dot(x_prev, w_ref[3], preferred_element_type=jnp.float32)
              + bias)
    y_odd = (jnp.dot(x, w_ref[2], preferred_element_type=jnp.float32)
             + jnp.dot(x_next, w_ref[0], preferred_element_type=jnp.float32)
             + bias)

    # Write the two lane-halves; at production C (multiple of 128) these are
    # unmasked lane-dense stores.
    y_ref[:, :, :C] = y_even.reshape(bt, T, C).astype(y_ref.dtype)
    y_ref[:, :, C:] = y_odd.reshape(bt, T, C).astype(y_ref.dtype)


def _largest_divisor_at_most(n, cap):
    cap = max(1, min(n, cap))
    for d in range(cap, 0, -1):
        if n % d == 0:
            return d
    return 1


@partial(jax.jit, static_argnames=("target_block_bytes",))
def upsample1d(x, w, b, *, target_block_bytes=2 * 1024 * 1024):
    """ConvTranspose1d(dim, dim, 4, 2, 1).

    x: (B, C, T) (PyTorch NCT); w: (C_in, C_out, 4); b: (C,)  ->  (B, C, 2T).
    """
    B, C, T = x.shape
    itemsize = jnp.dtype(x.dtype).itemsize

    # Tiny host-side weight prep (O(C^2), once per call): stack taps so the
    # kernel can index w_ref[k] -> (C_in, C_out).
    w_taps = jnp.transpose(w, (2, 0, 1))                        # (4, C, C)
    b_row = b.reshape(1, C)

    # ---- batch-tile selection -------------------------------------------
    # T stays whole per block (the +/-1 taps never cross a block boundary ->
    # no halo); batch is tiled so the input block is ~target_block_bytes
    # (default 2 MiB -> ~85%+ of HBM roofline per measured tile sweeps, and
    # the f32 temporaries + double buffers stay ~20-25 MiB, safe for v7x's
    # 64 MiB VMEM).  bt is also capped at B//2 so grid >= 2 and both v7x
    # TensorCores get work.
    max_rows = max(1, target_block_bytes // (itemsize * C))
    bt_cap = max(1, max_rows // T)
    if B >= 2:
        bt_cap = min(bt_cap, max(1, B // 2))
    bt = _largest_divisor_at_most(B, bt_cap)
    grid = (B // bt,)

    # Rough per-step live bytes: double-buffered in/out blocks (~6x in_block)
    # + f32 temps (~5x) + per-tap weights; raise the scoped-VMEM limit above
    # the v5e/v6e defaults so the larger tiles compile.
    in_block = bt * C * T * itemsize
    vmem_est = 12 * in_block + 64 * C * C + (1 << 20)
    vmem_limit = int(min(112 * 2**20, max(32 * 2**20, 2 * vmem_est)))

    out = pl.pallas_call(
        upsample1d_kernel,
        out_shape=jax.ShapeDtypeStruct((B, T, 2 * C), x.dtype),
        grid=grid,
        in_specs=[
            pl.BlockSpec((bt, C, T), lambda i: (i, 0, 0)),      # NCT input block
            pl.BlockSpec((4, C, C), lambda i: (0, 0, 0)),       # grid-invariant weights
            pl.BlockSpec((1, C), lambda i: (0, 0)),             # grid-invariant bias
        ],
        out_specs=pl.BlockSpec((bt, T, 2 * C), lambda i: (i, 0, 0)),
        compiler_params=pltpu.CompilerParams(
            dimension_semantics=("parallel",),
            vmem_limit_bytes=vmem_limit,
        ),
    )(x, w_taps, b_row)

    # (B, T, 2C) with row t = [even_t | odd_t]  ->  (B, 2T, C) is a free
    # row-major reinterpretation; the final transpose to PyTorch NCT is the
    # single remaining wrapper HBM pass.
    # TODO(synk): channels-last consumers should consume out.reshape(B, 2T, C)
    # directly and skip this transpose entirely.
    return jnp.transpose(out.reshape(B, 2 * T, C), (0, 2, 1))


def upsample1d_ref(x, w, b):
    """Reference ConvTranspose1d via input-dilated conv (matches PyTorch semantics)."""
    K = w.shape[-1]
    w_conv = jnp.flip(jnp.transpose(w, (1, 0, 2)), axis=-1)     # (C_out, C_in, K), flipped
    y = lax.conv_general_dilated(
        x, w_conv,
        window_strides=(1,),
        padding=[(K - 1 - 1, K - 1 - 1)],                       # K - 1 - padding = 2
        lhs_dilation=(2,),
        dimension_numbers=("NCH", "OIH", "NCH"),
    )
    return y + b[None, :, None]


if __name__ == "__main__":
    dim = 4       # channels (Upsample1d(dim))
    B, T = 4, 16

    key = jax.random.PRNGKey(0)
    kx, kw, kb = jax.random.split(key, 3)
    x = jax.random.normal(kx, (B, dim, T), dtype=jnp.float32)
    # ConvTranspose1d weight shape: (in_channels, out_channels, kernel_size)
    w = 0.1 * jax.random.normal(kw, (dim, dim, 4), dtype=jnp.float32)
    b = 0.1 * jax.random.normal(kb, (dim,), dtype=jnp.float32)

    # bt is capped at B//2 -> batch tile of 2 -> grid=(2,), exercising the
    # multi-block pipelined path even at this tiny test size.
    y = jax.block_until_ready(upsample1d(x, w, b))
    y_ref = jax.block_until_ready(upsample1d_ref(x, w, b))

    assert y.shape == (B, dim, 2 * T), y.shape
    err = float(jnp.max(jnp.abs(y - y_ref)))
    assert jnp.allclose(y, y_ref, atol=1e-5, rtol=1e-5), err
    print("KERNEL_OK")
</pallas_src>

<mosaic_0001>
module attributes {stable_mosaic.version = 11 : i64} {
  func.func @upsample1d_kernel(%arg0: i32, %arg1: memref<2x4x16xf32, #tpu.memory_space<vmem>>, %arg2: memref<4x4x4xf32, #tpu.memory_space<vmem>>, %arg3: memref<1x4xf32, #tpu.memory_space<vmem>>, %arg4: memref<2x16x8xf32, #tpu.memory_space<vmem>>) attributes {dimension_semantics = [#tpu.dimension_semantics<parallel>], iteration_bounds = array<i64: 2>, scalar_prefetch = 0 : i64, scratch_operands = 0 : i64, tpu.core_type = #tpu.core_type<tc>, window_params = [{transform_indices = @transform_0, window_bounds = array<i64: 2, 4, 16>}, {pipeline_mode = #tpu.pipeline_mode<synchronous>, transform_indices = @transform_1, window_bounds = array<i64: 4, 4, 4>}, {pipeline_mode = #tpu.pipeline_mode<synchronous>, transform_indices = @transform_2, window_bounds = array<i64: 1, 4>}, {transform_indices = @transform_3, window_bounds = array<i64: 2, 16, 8>}]} {
    %c0 = arith.constant 0 : index
    %c0_0 = arith.constant 0 : index
    %c0_1 = arith.constant 0 : index
    %0 = vector.load %arg1[%c0, %c0_0, %c0_1] : memref<2x4x16xf32, #tpu.memory_space<vmem>>, vector<2x4x16xf32>
    %1 = tpu.transpose %0, [0, 2, 1] : vector<2x4x16xf32> -> vector<2x16x4xf32>
    %2 = vector.shape_cast %1 : vector<2x16x4xf32> to vector<32x4xf32>
    %3 = tpu.iota {dimensions = array<i32: 1>} : vector<2x16x1xi32>
    %4 = vector.shape_cast %3 : vector<2x16x1xi32> to vector<32x1xi32>
    %c0_i32 = arith.constant 0 : i32
    %5 = vector.broadcast %c0_i32 : i32 to vector<32x1xi32>
    %6 = arith.cmpi eq, %4, %5 : vector<32x1xi32>
    %c1_i32 = arith.constant 1 : i32
    %7 = tpu.dynamic_rotate %2 by %c1_i32 dim 0 : vector<32x4xf32>, i32 -> vector<32x4xf32>
    %cst = arith.constant 0.000000e+00 : f32
    %8 = vector.shape_cast %6 : vector<32x1xi1> to vector<32x1xi1>
    %9 = vector.broadcast %8 : vector<32x1xi1> to vector<32x4xi1>
    %10 = vector.broadcast %cst : f32 to vector<32x4xf32>
    %11 = arith.select %9, %10, %7 : vector<32x4xi1>, vector<32x4xf32>
    %c15_i32 = arith.constant 15 : i32
    %12 = vector.broadcast %c15_i32 : i32 to vector<32x1xi32>
    %13 = arith.cmpi eq, %4, %12 : vector<32x1xi32>
    %c31_i32 = arith.constant 31 : i32
    %14 = tpu.dynamic_rotate %2 by %c31_i32 dim 0 : vector<32x4xf32>, i32 -> vector<32x4xf32>
    %cst_2 = arith.constant 0.000000e+00 : f32
    %15 = vector.shape_cast %13 : vector<32x1xi1> to vector<32x1xi1>
    %16 = vector.broadcast %15 : vector<32x1xi1> to vector<32x4xi1>
    %17 = vector.broadcast %cst_2 : f32 to vector<32x4xf32>
    %18 = arith.select %16, %17, %14 : vector<32x4xi1>, vector<32x4xf32>
    %c0_3 = arith.constant 0 : index
    %c0_4 = arith.constant 0 : index
    %19 = vector.load %arg3[%c0_3, %c0_4] : memref<1x4xf32, #tpu.memory_space<vmem>>, vector<1x4xf32>
    %c1 = arith.constant 1 : index
    %c0_5 = arith.constant 0 : index
    %c0_6 = arith.constant 0 : index
    %20 = vector.load %arg2[%c1, %c0_5, %c0_6] : memref<4x4x4xf32, #tpu.memory_space<vmem>>, vector<1x4x4xf32>
    %21 = vector.shape_cast %20 : vector<1x4x4xf32> to vector<4x4xf32>
    %cst_7 = arith.constant dense<0.000000e+00> : vector<32x4xf32>
    %22 = tpu.matmul %2, %21, %cst_7 {dimension_numbers = #tpu.dot_dimension_numbers<[1], [0], [0], [1], [0, 0, 1, 1], [], []>} : vector<32x4xf32>, vector<4x4xf32>, vector<32x4xf32> -> vector<32x4xf32>
    %c3 = arith.constant 3 : index
    %c0_8 = arith.constant 0 : index
    %c0_9 = arith.constant 0 : index
    %23 = vector.load %arg2[%c3, %c0_8, %c0_9] : memref<4x4x4xf32, #tpu.memory_space<vmem>>, vector<1x4x4xf32>
    %24 = vector.shape_cast %23 : vector<1x4x4xf32> to vector<4x4xf32>
    %cst_10 = arith.constant dense<0.000000e+00> : vector<32x4xf32>
    %25 = tpu.matmul %11, %24, %cst_10 {dimension_numbers = #tpu.dot_dimension_numbers<[1], [0], [0], [1], [0, 0, 1, 1], [], []>} : vector<32x4xf32>, vector<4x4xf32>, vector<32x4xf32> -> vector<32x4xf32>
    %26 = arith.addf %22, %25 : vector<32x4xf32>
    %27 = vector.broadcast %19 : vector<1x4xf32> to vector<32x4xf32>
    %28 = arith.addf %26, %27 : vector<32x4xf32>
    %c2 = arith.constant 2 : index
    %c0_11 = arith.constant 0 : index
    %c0_12 = arith.constant 0 : index
    %29 = vector.load %arg2[%c2, %c0_11, %c0_12] : memref<4x4x4xf32, #tpu.memory_space<vmem>>, vector<1x4x4xf32>
    %30 = vector.shape_cast %29 : vector<1x4x4xf32> to vector<4x4xf32>
    %cst_13 = arith.constant dense<0.000000e+00> : vector<32x4xf32>
    %31 = tpu.matmul %2, %30, %cst_13 {dimension_numbers = #tpu.dot_dimension_numbers<[1], [0], [0], [1], [0, 0, 1, 1], [], []>} : vector<32x4xf32>, vector<4x4xf32>, vector<32x4xf32> -> vector<32x4xf32>
    %c0_14 = arith.constant 0 : index
    %c0_15 = arith.constant 0 : index
    %c0_16 = arith.constant 0 : index
    %32 = vector.load %arg2[%c0_14, %c0_15, %c0_16] : memref<4x4x4xf32, #tpu.memory_space<vmem>>, vector<1x4x4xf32>
    %33 = vector.shape_cast %32 : vector<1x4x4xf32> to vector<4x4xf32>
    %cst_17 = arith.constant dense<0.000000e+00> : vector<32x4xf32>
    %34 = tpu.matmul %18, %33, %cst_17 {dimension_numbers = #tpu.dot_dimension_numbers<[1], [0], [0], [1], [0, 0, 1, 1], [], []>} : vector<32x4xf32>, vector<4x4xf32>, vector<32x4xf32> -> vector<32x4xf32>
    %35 = arith.addf %31, %34 : vector<32x4xf32>
    %36 = vector.broadcast %19 : vector<1x4xf32> to vector<32x4xf32>
    %37 = arith.addf %35, %36 : vector<32x4xf32>
    %38 = vector.shape_cast %28 : vector<32x4xf32> to vector<2x16x4xf32>
    %c0_18 = arith.constant 0 : index
    %c0_19 = arith.constant 0 : index
    %c0_20 = arith.constant 0 : index
    %39 = vector.load %arg4[%c0_18, %c0_19, %c0_20] : memref<2x16x8xf32, #tpu.memory_space<vmem>>, vector<2x16x4xf32>
    tpu.vector_store %arg4[%c0_18, %c0_19, %c0_20], %38 {strides = array<i32>} : memref<2x16x8xf32, #tpu.memory_space<vmem>>, vector<2x16x4xf32>,
    %40 = vector.shape_cast %37 : vector<32x4xf32> to vector<2x16x4xf32>
    %c0_21 = arith.constant 0 : index
    %c0_22 = arith.constant 0 : index
    %c4 = arith.constant 4 : index
    %41 = vector.load %arg4[%c0_21, %c0_22, %c4] : memref<2x16x8xf32, #tpu.memory_space<vmem>>, vector<2x16x4xf32>
    tpu.vector_store %arg4[%c0_21, %c0_22, %c4], %40 {strides = array<i32>} : memref<2x16x8xf32, #tpu.memory_space<vmem>>, vector<2x16x4xf32>,
    return
  }
  func.func @transform_0(%arg0: i32) -> (i32, i32, i32) {
    %c0_i32 = arith.constant 0 : i32
    %c0_i32_0 = arith.constant 0 : i32
    %c0_i32_1 = arith.constant 0 : i32
    return %arg0, %c0_i32, %c0_i32_0 : i32, i32, i32
  }
  func.func @transform_1(%arg0: i32) -> (i32, i32, i32) {
    %c0_i32 = arith.constant 0 : i32
    %c0_i32_0 = arith.constant 0 : i32
    %c0_i32_1 = arith.constant 0 : i32
    %c0_i32_2 = arith.constant 0 : i32
    return %c0_i32, %c0_i32_0, %c0_i32_1 : i32, i32, i32
  }
  func.func @transform_2(%arg0: i32) -> (i32, i32) {
    %c0_i32 = arith.constant 0 : i32
    %c0_i32_0 = arith.constant 0 : i32
    %c0_i32_1 = arith.constant 0 : i32
    return %c0_i32, %c0_i32_0 : i32, i32
  }
  func.func @transform_3(%arg0: i32) -> (i32, i32, i32) {
    %c0_i32 = arith.constant 0 : i32
    %c0_i32_0 = arith.constant 0 : i32
    %c0_i32_1 = arith.constant 0 : i32
    return %arg0, %c0_i32, %c0_i32_0 : i32, i32, i32
  }
}

</mosaic_0001>

<bundles_post_ra>
// kernel: upsample1d.1
= control target key start
LH: loop header
LB: loop body
LE: loop exit
PB: predicated region body
PF: predicated region fallthrough
CT: control target
= control target key end

     0   :  { %s906_s12 = smov 0   ;;  %s984_s0 = inlined_call_operand.vmem [shape: f32[4,4,16], index: 0, kind: input, shape index: {}]   ;;  %s985_s1 = inlined_call_operand.vmem [shape: f32[4,4,4], index: 1, kind: input, shape index: {}]   ;;  %s986_s2 = inlined_call_operand.vmem [shape: f32[1,4], index: 2, kind: input, shape index: {}]   ;;  %s987_s3 = inlined_call_operand.vmem [shape: f32[4,16,8], index: 3, kind: output, shape index: {}]  }
   0x1 LB: > { %s778_s13 = sadd.s32 4294967295, %s883_s12   ;;  %p782_p0 = scmp.ge.s32.totalorder %s883_s12, 1  ;;  %s883_s12 = sphi %s906_s12, %s13_s12  }
   0x2   : > { %p138_p1 = scmp.lt.s32.totalorder %s883_s12, 3 }
   0x4   : > { %p139_p2 = pnand %p782_p0, %p138_p1 }
   0x5   : > { %s783_s14 = sshll.u32 (!%p139_p2), %s778_s13, 1  ;;  %s885_s6 = smov (!%p139_p2), 4  }
   0x6   : > { %142 = sbr.rel (%p139_p2) target bundleno = 484 (0x1e4), region = 32  ;;  %p164_p3 = scmp.lt.s32.totalorder (!%p139_p2), %s783_s14, 3 }
   0xb   : > { %s989_s14 = smov (!%p164_p3, %s783_s14), 3  ;;  %v788_v2 = vld [vmem:[%s985_s1 + $0x4] sm:$0xf]  ;;  %vm301_vm0 = vcmask 1043456   ;;  %v789_v3 = vld [vmem:[%s985_s1 + $0xc] sm:$0xf]  ;;  %v242_v7 = vlaneseq }
   0xc   : > { %s784_s15 = sshll.u32 %s989_s14, 2  ;;  %843 = vmatprep.subr.msk.mxu1 %vm301_vm0, %v788_v2  ;;  %835 = vmatprep.subr.msk.mxu0 %vm301_vm0, %v789_v3  ;;  %v502_v4 = vld [vmem:[%s985_s1] sm:$0xf]  ;;  %v801_v5 = vld [vmem:[%s985_s1 + $0x8] sm:$0xf]  ;;  %vm288_vm1 = vcmask 31744  }
   0xd   : > { %s167_s18 = scalar_lea.vmem %s984_s0, %s784_s15  ;;  %844 = vmatpush3.msk.msra.mxu1 %vm301_vm0, %v788_v2  ;;  %836 = vmatpush3.msk.msra.mxu0 %vm301_vm0, %v789_v3  ;;  %v243_v9 = vshrl.u32 %v242_v7, 7  ;;  %s814_s27 = sshll.u32 %s989_s14, 4  ;;  %v800_v35 = vld [vmem:[%s986_s2] ss:$0 sm:$0xff]  ;;  %vm715_vm6 = vcmask 64544  }
   0xe   : > { %v177_v0 = vld [vmem:[%s167_s18 + $0x4] sm:$0xf]  ;;  %v176_v1 = vld [vmem:[%s167_s18] sm:$0xf]  ;;  %851 = vmatprep.subr.msk.mxu0 %vm301_vm0, %v502_v4  ;;  %859 = vmatprep.subr.msk.mxu1 %vm301_vm0, %v801_v5  ;;  %s967_s5 = scalar_lea.vmem %s987_s3, %s814_s27 }
   0xf   : > { %210 = vxpose.xlu0.b32.start.end [1/1] (short) (narrow) %v177_v0, 16  ;;  %vm245_vm2 = vcmp.eq.s32.totalorder %v243_v9, 0  ;;  %vm251_vm3 = vcmp.lt.s32.totalorder %v243_v9, 1  ;;  %v244_v24 = vadd.s32 8, %v243_v9  ;;  %vm270_vm4 = vcmp.lt.s32.totalorder %v243_v9, 7 }
  0x11   : > { %vm265_vm5 = vcmp.eq.s32.totalorder %v244_v24, 15 }
  0x14   : > { %178 = vxpose.xlu0.b32.start.end [1/1] (short) (narrow) %v176_v1, 16 }
  0x8b   : > { %v226_v6 = vpop.trf.xlu0 }
  0x8c   : > { %v249_v16 = vrot.slane %v226_v6, 7  ;;  %v268_v22 = vrot.slane %v226_v6, 1 }
  0x8f   : > { %v227_v8 = vpop.trf.xlu0 }
  0x90   : > { %v250_v11 = vrot.slane %v227_v8, 7  ;;  %v269_v26 = vrot.slane %v227_v8, 1 }
  0x92   : > { %v252_v25 = vsel %vm251_vm3, %v249_v16, %v250_v11  ;;  %v271_v30 = vsel %vm270_vm4, %v268_v22, %v269_v26 }
  0x93   : > { %v194_v10 = vpop.trf.xlu0 }
  0x94   : > { %v247_v12 = vrot.slane %v194_v10, 7  ;;  %845 = vmatprep.mubr.msk.f32.mxu1 %vm288_vm1, %v194_v10  ;;  %v266_v23 = vrot.slane %v194_v10, 1 }
  0x96   : > { %v255_v13 = vsel %vm251_vm3, %v250_v11, %v247_v12  ;;  %v274_v31 = vsel %vm270_vm4, %v269_v26, %v266_v23 }
  0x97   : > { %v195_v14 = vpop.trf.xlu0  ;;  %v260_v15 = vsel %vm245_vm2, 0.0, %v255_v13  ;;  %v282_v32 = vsel %vm265_vm5, 0.0, %v274_v31 }
  0x98   : > { %v248_v17 = vrot.slane %v195_v14, 7  ;;  %837 = vmatprep.mubr.msk.f32.mxu0 %vm288_vm1, %v260_v15  ;;  %846 = vmatmul.mubr.msk.f32.vlgmr.msra.gmra.mxu1 %vm288_vm1, %v195_v14  ;;  %v267_v20 = vrot.slane %v195_v14, 1 }
  0x99   : > { %848 = vmatprep.mubr.msk.f32.mxu1 %vm288_vm1, %v226_v6  ;;  %860 = vmatpush3.msk.msra.mxu1 %vm301_vm0, %v801_v5 }
  0x9a   : > { %v253_v18 = vsel %vm251_vm3, %v248_v17, %v249_v16  ;;  %v254_v19 = vsel %vm251_vm3, %v247_v12, %v248_v17  ;;  %v273_v27 = vsel %vm270_vm4, %v266_v23, %v267_v20  ;;  %v272_v28 = vsel %vm270_vm4, %v267_v20, %v268_v22 }
  0x9b   : > { %v262_v21 = vsel %vm245_vm2, 0.0, %v253_v18  ;;  %838 = vmatmul.mubr.msk.f32.vlgmr.msra.gmra.mxu0 %vm288_vm1, %v254_v19  ;;  %v280_v29 = vsel %vm265_vm5, 0.0, %v272_v28 }
  0x9c   : > { %852 = vmatpush3.msk.msra.mxu0 %vm301_vm0, %v502_v4  ;;  %840 = vmatprep.mubr.msk.f32.mxu0 %vm288_vm1, %v262_v21 }
  0x9d   : > { %849 = vmatmul.mubr.msk.f32.gmra.mxu1 %vm288_vm1, %v227_v8 }
  0x9e   : > { %861 = vmatprep.mubr.msk.f32.mxu1 %vm288_vm1, %v194_v10 }
  0x9f   : > { %841 = vmatmul.mubr.msk.f32.gmra.mxu0 %vm288_vm1, %v252_v25 }
  0xa0   : > { %853 = vmatprep.mubr.msk.f32.mxu0 %vm288_vm1, %v273_v27 }
  0xa1   : > { %862 = vmatmul.mubr.msk.f32.vlgmr.msra.gmra.mxu1 %vm288_vm1, %v195_v14 }
  0xa2   : > { %864 = vmatprep.mubr.msk.f32.mxu1 %vm288_vm1, %v226_v6 }
  0xa3   : > { %854 = vmatmul.mubr.msk.f32.vlgmr.msra.gmra.mxu0 %vm288_vm1, %v280_v29 }
  0xa4   : > { %856 = vmatprep.mubr.msk.f32.mxu0 %vm288_vm1, %v271_v30 }
  0xa5   : > { %865 = vmatmul.mubr.msk.f32.gmra.mxu1 %vm288_vm1, %v227_v8 }
  0xa7   : > { %857 = vmatmul.mubr.msk.f32.gmra.mxu0 %vm288_vm1, %v282_v32 }
 0x158   : > { %v847_v33 = vpop.f32.mrf.mxu1 }
 0x15a   : > { %v471_v34 = vpop.f32.mrf.mxu1 }
 0x15b   : > { %v839_v36 = vpop.f32.mrf.mxu0 }
 0x15c   : > { %v477_v37 = vadd.f32 %v847_v33, %v839_v36 }
 0x15d   : > { %v850_v38 = vpop.f32.mrf.mxu1  ;;  %v371_v39 = vpop.f32.mrf.mxu0 }
 0x15e   : > { %v497_v40 = vadd.f32 %v800_v35, %v477_v37  ;;  %v472_v41 = vadd.f32 %v471_v34, %v371_v39 }
 0x15f   : > { %v481_v42 = vpop.f32.mrf.mxu1  ;;  %v842_v43 = vpop.f32.mrf.mxu0 }
 0x160   : > { %696 = vst.msk [vmem:[%s967_s5 + $0x8] sm:$0xff] %vm288_vm1, %v497_v40  ;;  %v496_v44 = vadd.f32 %v800_v35, %v472_v41  ;;  %v487_v45 = vadd.f32 %v850_v38, %v842_v43 }
 0x161   : > { %v863_v46 = vpop.f32.mrf.mxu1  ;;  %v381_v47 = vpop.f32.mrf.mxu0 }
 0x162   : > { %695 = vst.msk [vmem:[%s967_s5] sm:$0xff] %vm288_vm1, %v496_v44  ;;  %v499_v48 = vadd.f32 %v800_v35, %v487_v45  ;;  %v482_v49 = vadd.f32 %v481_v42, %v381_v47 }
 0x163   : > { %v672_v50 = vpop.f32.mrf.mxu1  ;;  %v855_v51 = vpop.f32.mrf.mxu0 }
 0x164   : > { %698 = vst.msk [vmem:[%s967_s5 + $0x18] sm:$0xff] %vm288_vm1, %v499_v48  ;;  %v498_v52 = vadd.f32 %v800_v35, %v482_v49  ;;  %v678_v53 = vadd.f32 %v863_v46, %v855_v51 }
 0x165   : > { %v866_v54 = vpop.f32.mrf.mxu1  ;;  %v584_v55 = vpop.f32.mrf.mxu0 }
 0x166   : > { %697 = vst.msk [vmem:[%s967_s5 + $0x10] sm:$0xff] %vm288_vm1, %v498_v52  ;;  %v673_v56 = vadd.f32 %v672_v50, %v584_v55  ;;  %v692_v57 = vadd.f32 %v800_v35, %v678_v53 }
 0x167   : > { %v858_v58 = vpop.f32.mrf.mxu0  ;;  %v682_v60 = vpop.f32.mrf.mxu1 }
 0x168   : > { %v688_v59 = vadd.f32 %v866_v54, %v858_v58  ;;  %705 = vrot.lane.b32.xlu1 %v692_v57, %s885_s6  ;;  %v691_v62 = vadd.f32 %v800_v35, %v673_v56 }
 0x169   : > { %v594_v61 = vpop.f32.mrf.mxu0 }
 0x16a   : > { %v694_v63 = vadd.f32 %v800_v35, %v688_v59  ;;  %v683_v0 = vadd.f32 %v682_v60, %v594_v61 }
 0x16c   : > { %703 = vrot.lane.b32.xlu1 %v691_v62, %s885_s6  ;;  %709 = vrot.lane.b32.xlu0 %v694_v63, %s885_s6  ;;  %v693_v1 = vadd.f32 %v800_v35, %v683_v0 }
 0x170   : > { %707 = vrot.lane.b32.xlu1 %v693_v1, %s885_s6 }
 0x1da   : > { %v706_v2 = vpop.permute.xlu1 %705 }
 0x1db   : > { %717 = vst.msk [vmem:[%s967_s5 + $0x8] sm:$0xff] %vm715_vm6, %v706_v2 }
 0x1de   : > { %v704_v3 = vpop.permute.xlu1 %703  ;;  %v710_v4 = vpop.permute.xlu0 %709 }
 0x1df   : > { %716 = vst.msk [vmem:[%s967_s5] sm:$0xff] %vm715_vm6, %v704_v3  ;;  %719 = vst.msk [vmem:[%s967_s5 + $0x18] sm:$0xff] %vm715_vm6, %v710_v4 }
 0x1e2   : > { %v708_v5 = vpop.permute.xlu1 %707 }
 0x1e3   : > { %718 = vst.msk [vmem:[%s967_s5 + $0x10] sm:$0xff] %vm715_vm6, %v708_v5 }
 0x1e4 PF: > { %s13_s12 = sadd.s32 1, %s883_s12  }
 0x1e5   : > { %p10_p4 = scmp.ge.s32.totalorder %s13_s12, 4  }
 0x1e7   :  { %12 = sbr.rel (!%p10_p4) target bundleno = 1 (0x1), region = 65 }

</bundles_post_ra>
